<compile_context>
chip_gen: v6e
topology: v6e:2x2x1
jax: 0.10.0
libtpu: 0.0.40
codegen_flags: <defaults>
</compile_context>

<pallas_src>
import functools
from math import exp

import jax
import jax.numpy as jnp
import numpy as np
from jax import lax
from jax.experimental import pallas as pl
from jax.experimental.pallas import tpu as pltpu

C1 = 0.01 ** 2
C2 = 0.03 ** 2


def _gaussian_1d(window_size: int, sigma: float) -> np.ndarray:
    g = np.array(
        [exp(-((x - window_size // 2) ** 2) / float(2 * sigma ** 2))
         for x in range(window_size)],
        dtype=np.float64,
    )
    return g / g.sum()


def _conv_matrices(H: int, W: int, window_size: int, sigma: float):
    """Banded Toeplitz matrices so that colA @ plane @ rowB equals the
    zero-padded depthwise 2D Gaussian convolution (PyTorch F.conv2d with
    padding=window_size//2), using the separable window = outer(g, g)."""
    g = _gaussian_1d(window_size, sigma)
    pad = window_size // 2
    colA = np.zeros((H, H), dtype=np.float64)   # (out_row, in_row)
    for i in range(H):
        for r in range(max(0, i - pad), min(H, i + pad + 1)):
            colA[i, r] = g[r - i + pad]
    rowB = np.zeros((W, W), dtype=np.float64)   # (in_col, out_col)
    for j in range(W):
        for c in range(max(0, j - pad), min(W, j + pad + 1)):
            rowB[c, j] = g[c - j + pad]
    return colA.astype(np.float32), rowB.astype(np.float32)


def _ssim_kernel(x1_ref, x2_ref, colA_ref, rowB_ref, out_ref, *, num_planes):
    # x1_ref / x2_ref: (G, H, W) unpadded planes (native dtype) for G planes.
    # colA_ref: (H, H), rowB_ref: (W, W) banded Gaussian conv matrices
    # (constant index_map -> fetched once, resident in VMEM).
    G = num_planes
    H = colA_ref.shape[0]
    W = rowB_ref.shape[0]

    a = x1_ref[...].astype(jnp.float32)          # cast in VMEM (free on VPU)
    b = x2_ref[...].astype(jnp.float32)

    # Stack the five conv inputs so the depthwise Gaussian conv becomes two
    # batched MXU contractions instead of 12*G tiny matmuls.
    slab = jnp.concatenate([a, b, a * a, b * b, a * b], axis=0)   # (5G, H, W)

    # Row pass (1-D Gaussian along W): one (5G*H, W) @ (W, W) matmul.
    t = jnp.dot(slab.reshape(5 * G * H, W), rowB_ref[...],
                preferred_element_type=jnp.float32)
    t = t.reshape(5 * G, H, W)

    # Column pass (1-D Gaussian along H): one batched matmul against a
    # broadcast Toeplitz matrix (same layout as flash 'bqk,bkd->bqd').
    # TODO(synk): fuse further into a single (H,H)@(H,5G*W) matmul via a
    # plane transpose (pltpu.einshape) once the relayout cost is validated.
    Ab = jnp.broadcast_to(colA_ref[...], (5 * G, H, H))
    u = jnp.einsum('gih,ghw->giw', Ab, t,
                   preferred_element_type=jnp.float32)            # (5G, H, W)

    mu1 = u[0 * G:1 * G]
    mu2 = u[1 * G:2 * G]
    e_aa = u[2 * G:3 * G]
    e_bb = u[3 * G:4 * G]
    e_ab = u[4 * G:5 * G]

    mu1_sq = mu1 * mu1
    mu2_sq = mu2 * mu2
    mu1_mu2 = mu1 * mu2
    sigma1_sq = e_aa - mu1_sq
    sigma2_sq = e_bb - mu2_sq
    sigma12 = e_ab - mu1_mu2

    num = (2.0 * mu1_mu2 + C1) * (2.0 * sigma12 + C2)
    den = (mu1_sq + mu2_sq + C1) * (sigma1_sq + sigma2_sq + C2)
    inv = pl.reciprocal(den, approx=True)   # EUP slot (idle otherwise)
    inv = inv * (2.0 - den * inv)           # one Newton step (~1e-6 rel)

    # Per-block scalar partial sum: the SSIM map never goes back to HBM.
    out_ref[...] = jnp.sum(num * inv, keepdims=True)              # (1, 1, 1)


def ssim(img1, img2, window_size=11, size_average=True):
    """SSIM forward pass; img1/img2 are (B, C, H, W) arrays (NCHW)."""
    assert img1.shape == img2.shape and img1.ndim == 4
    B, C, H, W = img1.shape
    N = B * C

    # Keep native dtype (bf16/f16/u8 pass straight through; cast happens in
    # VMEM inside the kernel).
    x1 = img1.reshape(N, H, W)
    x2 = img2.reshape(N, H, W)

    colA_np, rowB_np = _conv_matrices(H, W, window_size, 1.5)
    colA = jnp.asarray(colA_np)
    rowB = jnp.asarray(rowB_np)

    # ---- Generation-aware VMEM budget ------------------------------------
    try:
        phys_vmem = int(pltpu.get_tpu_info().vmem_capacity_bytes)
    except Exception:
        phys_vmem = 64 * 1024 * 1024          # conservative (v7x per-core)
    vmem_limit = (phys_vmem * 3) // 4          # ~96 MiB v5e/v6e, ~48 MiB v7x

    in_itemsize = np.dtype(img1.dtype).itemsize

    def step_vmem_bytes(g):
        inputs = 2 * 2 * g * H * W * in_itemsize         # x1, x2 double-buffered
        consts = 2 * (H * H + W * W) * 4                 # colA/rowB (2 pipeline bufs)
        # slab + row-pass + col-pass results + broadcast colA + ~8 (G,H,W) temps
        interm = (3 * 5 * g * H * W + 5 * g * H * H + 8 * g * H * W) * 4
        out = 2 * 4
        return inputs + consts + interm + out

    budget = int(vmem_limit * 0.7)            # headroom for compiler scratch

    divisors = [d for d in range(1, N + 1) if N % d == 0]
    fitting = [d for d in divisors if step_vmem_bytes(d) <= budget] or [1]
    # Prefer >= 4 grid steps (pipeline overlap + both v7x TensorCores), then
    # >= 2, else the largest group that fits.
    G = 1
    for min_blocks in (4, 2, 1):
        cands = [d for d in fitting if N // d >= min_blocks]
        if cands:
            G = max(cands)
            break
    num_blocks = N // G
    # TODO(synk): planes too large for one VMEM block need banded H/W tiling
    # with a (window_size-1)-row halo and sliced Toeplitz bands (not wired).
    # TODO(synk): colA/rowB could be single-buffered (pipeline_mode=
    # pl.Buffered(1)) or copied once into VMEM scratch to reclaim their
    # second pipeline buffer for very large planes.

    kernel = functools.partial(_ssim_kernel, num_planes=G)

    partial_sums = pl.pallas_call(
        kernel,
        out_shape=jax.ShapeDtypeStruct((num_blocks, 1, 1), jnp.float32),
        grid_spec=pltpu.PrefetchScalarGridSpec(
            num_scalar_prefetch=0,
            grid=(num_blocks,),
            in_specs=[
                pl.BlockSpec((G, H, W), lambda i: (i, 0, 0)),
                pl.BlockSpec((G, H, W), lambda i: (i, 0, 0)),
                pl.BlockSpec((H, H), lambda i: (0, 0)),   # constant: fetched once
                pl.BlockSpec((W, W), lambda i: (0, 0)),   # constant: fetched once
            ],
            out_specs=pl.BlockSpec((1, 1, 1), lambda i: (i, 0, 0)),
        ),
        compiler_params=pltpu.CompilerParams(
            dimension_semantics=("parallel",),   # disjoint scalar outputs per step
            vmem_limit_bytes=int(vmem_limit),
        ),
    )(x1, x2, colA, rowB)

    total = jnp.sum(partial_sums, dtype=jnp.float32)
    if size_average:
        return total / jnp.float32(N * H * W)
    # TODO(synk): size_average=False (per-image mean) not wired; module default is True.
    raise NotImplementedError("size_average=False not implemented")


def ssim_ref(img1, img2, window_size=11):
    """Pure-JAX reference (mirrors the PyTorch code) for validation."""
    B, C, H, W = img1.shape
    pad = window_size // 2
    g = _gaussian_1d(window_size, 1.5)
    w2d = np.outer(g, g).astype(np.float32)
    win = jnp.asarray(np.broadcast_to(
        w2d, (C, 1, window_size, window_size)).copy())

    def conv(x):
        return lax.conv_general_dilated(
            x, win, window_strides=(1, 1),
            padding=[(pad, pad), (pad, pad)],
            dimension_numbers=("NCHW", "OIHW", "NCHW"),
            feature_group_count=C)

    mu1 = conv(img1)
    mu2 = conv(img2)
    mu1_sq, mu2_sq, mu1_mu2 = mu1 * mu1, mu2 * mu2, mu1 * mu2
    sigma1_sq = conv(img1 * img1) - mu1_sq
    sigma2_sq = conv(img2 * img2) - mu2_sq
    sigma12 = conv(img1 * img2) - mu1_mu2
    ssim_map = ((2 * mu1_mu2 + C1) * (2 * sigma12 + C2)) / (
        (mu1_sq + mu2_sq + C1) * (sigma1_sq + sigma2_sq + C2))
    return jnp.mean(ssim_map)


if __name__ == "__main__":
    key = jax.random.PRNGKey(0)
    k1, k2 = jax.random.split(key)
    img1 = jax.random.uniform(k1, (2, 4, 16, 16), dtype=jnp.float32)
    img2 = jax.random.uniform(k2, (2, 4, 16, 16), dtype=jnp.float32)

    out = jax.block_until_ready(ssim(img1, img2))
    ref = jax.block_until_ready(ssim_ref(img1, img2))
    assert abs(float(out) - float(ref)) < 1e-4, (float(out), float(ref))
    print("KERNEL_OK")
</pallas_src>

<mosaic_0001>
module attributes {stable_mosaic.version = 11 : i64} {
  func.func @_ssim_kernel(%arg0: i32, %arg1: memref<2x16x16xf32, #tpu.memory_space<vmem>>, %arg2: memref<2x16x16xf32, #tpu.memory_space<vmem>>, %arg3: memref<16x16xf32, #tpu.memory_space<vmem>>, %arg4: memref<16x16xf32, #tpu.memory_space<vmem>>, %arg5: memref<1x1x1xf32, #tpu.memory_space<vmem>>) attributes {dimension_semantics = [#tpu.dimension_semantics<parallel>], iteration_bounds = array<i64: 4>, scalar_prefetch = 0 : i64, scratch_operands = 0 : i64, tpu.core_type = #tpu.core_type<tc>, window_params = [{transform_indices = @transform_0, window_bounds = array<i64: 2, 16, 16>}, {transform_indices = @transform_1, window_bounds = array<i64: 2, 16, 16>}, {pipeline_mode = #tpu.pipeline_mode<synchronous>, transform_indices = @transform_2, window_bounds = array<i64: 16, 16>}, {pipeline_mode = #tpu.pipeline_mode<synchronous>, transform_indices = @transform_3, window_bounds = array<i64: 16, 16>}, {transform_indices = @transform_4, window_bounds = array<i64: 1, 1, 1>}]} {
    %c0 = arith.constant 0 : index
    %c0_0 = arith.constant 0 : index
    %c0_1 = arith.constant 0 : index
    %0 = vector.load %arg1[%c0, %c0_0, %c0_1] : memref<2x16x16xf32, #tpu.memory_space<vmem>>, vector<2x16x16xf32>
    %c0_2 = arith.constant 0 : index
    %c0_3 = arith.constant 0 : index
    %c0_4 = arith.constant 0 : index
    %1 = vector.load %arg2[%c0_2, %c0_3, %c0_4] : memref<2x16x16xf32, #tpu.memory_space<vmem>>, vector<2x16x16xf32>
    %2 = arith.mulf %0, %0 : vector<2x16x16xf32>
    %3 = arith.mulf %1, %1 : vector<2x16x16xf32>
    %4 = arith.mulf %0, %1 : vector<2x16x16xf32>
    %5 = tpu.concatenate %0, %1, %2, %3, %4 in 0 : vector<2x16x16xf32>, vector<2x16x16xf32>, vector<2x16x16xf32>, vector<2x16x16xf32>, vector<2x16x16xf32> -> vector<10x16x16xf32>
    %6 = vector.shape_cast %5 : vector<10x16x16xf32> to vector<160x16xf32>
    %c0_5 = arith.constant 0 : index
    %c0_6 = arith.constant 0 : index
    %7 = vector.load %arg4[%c0_5, %c0_6] : memref<16x16xf32, #tpu.memory_space<vmem>>, vector<16x16xf32>
    %cst = arith.constant dense<0.000000e+00> : vector<160x16xf32>
    %8 = tpu.matmul %6, %7, %cst {dimension_numbers = #tpu.dot_dimension_numbers<[1], [0], [0], [1], [0, 0, 1, 1], [], []>} : vector<160x16xf32>, vector<16x16xf32>, vector<160x16xf32> -> vector<160x16xf32>
    %9 = vector.shape_cast %8 : vector<160x16xf32> to vector<10x16x16xf32>
    %c0_7 = arith.constant 0 : index
    %c0_8 = arith.constant 0 : index
    %10 = vector.load %arg3[%c0_7, %c0_8] : memref<16x16xf32, #tpu.memory_space<vmem>>, vector<16x16xf32>
    %11 = vector.shape_cast %10 : vector<16x16xf32> to vector<1x16x16xf32>
    %12 = vector.broadcast %11 : vector<1x16x16xf32> to vector<10x16x16xf32>
    "tpu.trace_start"() <{level = 10 : i32, message = "gih,ghw->giw"}> : () -> ()
    %cst_9 = arith.constant dense<0.000000e+00> : vector<10x16x16xf32>
    %13 = tpu.matmul %12, %9, %cst_9 {dimension_numbers = #tpu.dot_dimension_numbers<[2], [1], [1], [2], [0, 0, 0, 1, 1, 2], [0], [0]>} : vector<10x16x16xf32>, vector<10x16x16xf32>, vector<10x16x16xf32> -> vector<10x16x16xf32>
    "tpu.trace_stop"() : () -> ()
    %14 = vector.extract_strided_slice %13 {offsets = [0, 0, 0], sizes = [2, 16, 16], strides = [1, 1, 1]} : vector<10x16x16xf32> to vector<2x16x16xf32>
    %15 = vector.extract_strided_slice %13 {offsets = [2, 0, 0], sizes = [2, 16, 16], strides = [1, 1, 1]} : vector<10x16x16xf32> to vector<2x16x16xf32>
    %16 = vector.extract_strided_slice %13 {offsets = [4, 0, 0], sizes = [2, 16, 16], strides = [1, 1, 1]} : vector<10x16x16xf32> to vector<2x16x16xf32>
    %17 = vector.extract_strided_slice %13 {offsets = [6, 0, 0], sizes = [2, 16, 16], strides = [1, 1, 1]} : vector<10x16x16xf32> to vector<2x16x16xf32>
    %18 = vector.extract_strided_slice %13 {offsets = [8, 0, 0], sizes = [2, 16, 16], strides = [1, 1, 1]} : vector<10x16x16xf32> to vector<2x16x16xf32>
    %19 = arith.mulf %14, %14 : vector<2x16x16xf32>
    %20 = arith.mulf %15, %15 : vector<2x16x16xf32>
    %21 = arith.mulf %14, %15 : vector<2x16x16xf32>
    %22 = arith.subf %16, %19 : vector<2x16x16xf32>
    %23 = arith.subf %17, %20 : vector<2x16x16xf32>
    %24 = arith.subf %18, %21 : vector<2x16x16xf32>
    %cst_10 = arith.constant 2.000000e+00 : f32
    %25 = vector.broadcast %cst_10 : f32 to vector<2x16x16xf32>
    %26 = arith.mulf %25, %21 : vector<2x16x16xf32>
    %cst_11 = arith.constant 9.99999974E-5 : f32
    %27 = vector.broadcast %cst_11 : f32 to vector<2x16x16xf32>
    %28 = arith.addf %26, %27 : vector<2x16x16xf32>
    %cst_12 = arith.constant 2.000000e+00 : f32
    %29 = vector.broadcast %cst_12 : f32 to vector<2x16x16xf32>
    %30 = arith.mulf %29, %24 : vector<2x16x16xf32>
    %cst_13 = arith.constant 8.99999984E-4 : f32
    %31 = vector.broadcast %cst_13 : f32 to vector<2x16x16xf32>
    %32 = arith.addf %30, %31 : vector<2x16x16xf32>
    %33 = arith.mulf %28, %32 : vector<2x16x16xf32>
    %34 = arith.addf %19, %20 : vector<2x16x16xf32>
    %cst_14 = arith.constant 9.99999974E-5 : f32
    %35 = vector.broadcast %cst_14 : f32 to vector<2x16x16xf32>
    %36 = arith.addf %34, %35 : vector<2x16x16xf32>
    %37 = arith.addf %22, %23 : vector<2x16x16xf32>
    %cst_15 = arith.constant 8.99999984E-4 : f32
    %38 = vector.broadcast %cst_15 : f32 to vector<2x16x16xf32>
    %39 = arith.addf %37, %38 : vector<2x16x16xf32>
    %40 = arith.mulf %36, %39 : vector<2x16x16xf32>
    %41 = tpu.reciprocal %40 {approx = true} : vector<2x16x16xf32> -> vector<2x16x16xf32>
    %42 = arith.mulf %40, %41 : vector<2x16x16xf32>
    %cst_16 = arith.constant 2.000000e+00 : f32
    %43 = vector.broadcast %cst_16 : f32 to vector<2x16x16xf32>
    %44 = arith.subf %43, %42 : vector<2x16x16xf32>
    %45 = arith.mulf %41, %44 : vector<2x16x16xf32>
    %46 = arith.mulf %33, %45 : vector<2x16x16xf32>
    %47 = vector.shape_cast %46 : vector<2x16x16xf32> to vector<1x2x16x16xf32>
    %cst_17 = arith.constant dense<0.000000e+00> : vector<1xf32>
    %48 = vector.multi_reduction <add>, %47, %cst_17 [1, 2, 3] : vector<1x2x16x16xf32> to vector<1xf32>
    %49 = vector.shape_cast %48 : vector<1xf32> to vector<1x1x1x1xf32>
    %50 = vector.extract %49[0, 0, 0, 0] : f32 from vector<1x1x1x1xf32>
    %51 = vector.broadcast %50 : f32 to vector<1x1x1xf32>
    %c0_18 = arith.constant 0 : index
    %c0_19 = arith.constant 0 : index
    %c0_20 = arith.constant 0 : index
    %52 = vector.load %arg5[%c0_18, %c0_19, %c0_20] : memref<1x1x1xf32, #tpu.memory_space<vmem>>, vector<1x1x1xf32>
    tpu.vector_store %arg5[%c0_18, %c0_19, %c0_20], %51 {strides = array<i32>} : memref<1x1x1xf32, #tpu.memory_space<vmem>>, vector<1x1x1xf32>,
    return
  }
  func.func @transform_0(%arg0: i32) -> (i32, i32, i32) {
    %c0_i32 = arith.constant 0 : i32
    %c0_i32_0 = arith.constant 0 : i32
    %c0_i32_1 = arith.constant 0 : i32
    return %arg0, %c0_i32, %c0_i32_0 : i32, i32, i32
  }
  func.func @transform_1(%arg0: i32) -> (i32, i32, i32) {
    %c0_i32 = arith.constant 0 : i32
    %c0_i32_0 = arith.constant 0 : i32
    %c0_i32_1 = arith.constant 0 : i32
    return %arg0, %c0_i32, %c0_i32_0 : i32, i32, i32
  }
  func.func @transform_2(%arg0: i32) -> (i32, i32) {
    %c0_i32 = arith.constant 0 : i32
    %c0_i32_0 = arith.constant 0 : i32
    %c0_i32_1 = arith.constant 0 : i32
    return %c0_i32, %c0_i32_0 : i32, i32
  }
  func.func @transform_3(%arg0: i32) -> (i32, i32) {
    %c0_i32 = arith.constant 0 : i32
    %c0_i32_0 = arith.constant 0 : i32
    %c0_i32_1 = arith.constant 0 : i32
    return %c0_i32, %c0_i32_0 : i32, i32
  }
  func.func @transform_4(%arg0: i32) -> (i32, i32, i32) {
    %c0_i32 = arith.constant 0 : i32
    %c0_i32_0 = arith.constant 0 : i32
    %c0_i32_1 = arith.constant 0 : i32
    return %arg0, %c0_i32, %c0_i32_0 : i32, i32, i32
  }
}

</mosaic_0001>

<bundles_post_ra>
// kernel: tpu_custom_call.1
= control target key start
LH: loop header
LB: loop body
LE: loop exit
PB: predicated region body
PF: predicated region fallthrough
CT: control target
= control target key end

     0   :  { %9 = vsyncpa [#allocation3], 0  ;;  %s2257_s0 = inlined_call_operand.hbm [shape: f32[8,16,16], index: 0, kind: input, shape index: {}]   ;;  %s2258_s1 = inlined_call_operand.hbm [shape: f32[8,16,16], index: 1, kind: input, shape index: {}]   ;;  %s2259_s2 = inlined_call_operand.hbm [shape: f32[16,16], index: 2, kind: input, shape index: {}]   ;;  %s2260_s3 = inlined_call_operand.hbm [shape: f32[16,16], index: 3, kind: input, shape index: {}]   ;;  %s2261_s4 = inlined_call_operand.vmem [shape: f32[4,1,1], index: 4, kind: output, shape index: {}]  }
   0x1   :  { %11 = vsyncpa [#allocation3 + $0x1], 0 }
   0x2   :  { %12 = vsyncpa [#allocation5], 0 }
   0x3   :  { %14 = vsyncpa [#allocation5 + $0x1], 0 }
   0x4   :  { %15 = vsyncpa [#allocation8], 0  ;;  %s1991_s15 = smov 0   ;;  %s1993_s16 = smov 0  }
   0x5   :  { %s1995_s17 = smov 0   ;;  %s1997_s18 = smov 0  }
   0x6 LB: > { %s2010_s19 = sadd.s32 4294967295, %s1958_s18   ;;  %p41_p0 = scmp.ne.s32.totalorder %s1950_s16, %s1946_s15  ;;  %s1958_s18 = sphi %s1997_s18, %s2276_s18   ;;  %s1954_s17 = sphi %s1995_s17, %s2275_s17   ;;  %s1950_s16 = sphi %s1993_s16, %s2274_s16   ;;  %s1946_s15 = sphi %s1991_s15, %s2273_s15  }
   0x7   : > { %p2262_p1 = scmp.eq.s32.totalorder %s2010_s19, 0  ;;  %p1498_p2 = scmp.ge.s32.totalorder %s1958_s18, 1 }
   0x8   : > { %p146_p3 = scmp.lt.s32.totalorder %s1958_s18, 5  ;;  %s1960_s22 = smov [#allocation6]  }
   0x9   : > { %p2018_p4 = por %p2262_p1, %p41_p0  ;;  %s158_s23 = sshll.u32 %s1960_s22, 4  ;;  %s159_s23 = int_to_ptr.vmem [resolvable:$true] %s158_s23 }
   0xa   : > { %p2022_p5 = pnand %p1498_p2, %p146_p3  ;;  %s1961_s25 = smov [#allocation7]  }
   0xb   : > { %s2264_s20 = scalar_select %p2018_p4, 1, 0 }
   0xc   : > { %p1741_p6 = pneg %p2022_p5  ;;  %s171_s26 = sshll.u32 %s1961_s25, 4  ;;  %s172_s26 = int_to_ptr.vmem [resolvable:$true] %s171_s26 }
   0xd   : > { %s1815_s27 = scalar_lea.vmem %s159_s23, 256  ;;  %p1823_p12 = scmp.lt.s32.totalorder %s159_s23, %s159_s23 }
   0xe   : > { %p2030_p7 = pnand %p1741_p6, %p2262_p1  ;;  %p1816_p9 = scmp.ne.s32.totalorder %s159_s23, %s1815_s27 }
   0xf   : > { %p1824_p13 = scmp.lt.s32.totalorder %s1815_s27, %s1815_s27 }
  0x10   : > { %p1806_p8 = pneg %p2030_p7 }
  0x11   : > { %p1825_p0 = por %p1824_p13, %p1823_p12 }
  0x12   : > { %p1818_p10 = pnand %p1816_p9, %p1806_p8 }
  0x14   : > { %p1819_p11 = pneg %p1818_p10 }
  0x16   : > { %p1826_p2 = pnand %p1825_p0, %p1819_p11 }
  0x18   : > { %1829 = shalt.err (!%p1826_p2)
}
  0x19   : > { %s1962_s28 = smov 128   ;;  %s1963_s29 = smov 8  }
  0x1a   : > { %1744 = dma.hbm_to_vmem [thread:$0]  (!%p2030_p7), %s2259_s2, 256, %s159_s23, [#allocation5], %s1962_s28, %s1962_s28, %s1963_s29  }
  0x1b   : > { %s1841_s6 = scalar_lea.vmem %s172_s26, 256  ;;  %p1849_p10 = scmp.lt.s32.totalorder %s172_s26, %s172_s26 }
  0x1c   : > { %p1842_p3 = scmp.ne.s32.totalorder %s172_s26, %s1841_s6  ;;  %p1850_p11 = scmp.lt.s32.totalorder %s1841_s6, %s1841_s6 }
  0x1e   : > { %p1844_p6 = pnand %p1842_p3, %p1806_p8  ;;  %p1851_p12 = por %p1850_p11, %p1849_p10 }
  0x20   : > { %p1845_p9 = pneg %p1844_p6 }
  0x22   : > { %p1852_p13 = pnand %p1851_p12, %p1845_p9 }
  0x24   : > { %1855 = shalt.err (!%p1852_p13)
}
  0x25   : > { %1747 = dma.hbm_to_vmem [thread:$0]  (!%p2030_p7), %s2260_s3, 256, %s172_s26, [#allocation8], %s1962_s28, %s1962_s28, %s1963_s29  }
  0x26   : > { %s2059_s9 = sadd.s32 1, %s1958_s18   ;;  %s28_s10 = sadd.s32 1, %s1954_s17 }
  0x27   : > { %s25_s11 = ssub.s32 %s1958_s18, %s2059_s9  ;;  %p35_p8 = scmp.ne.s32.totalorder %s1954_s17, %s1950_s16 }
  0x28   : > { %p26_p0 = scmp.eq.s32.totalorder %s25_s11, 0  ;;  %p36_p2 = scmp.eq.s32.totalorder %s1958_s18, 0 }
  0x29   : > { %p1757_p3 = scmp.lt.s32.totalorder %s1958_s18, 4  ;;  %s185_s12 = sand.u32 1, %s1954_s17  }
  0x2a   : > { %s2070_s13 = scalar_select %p26_p0, %s1954_s17, %s28_s10  }
  0x2b   : > { %p37_p6 = por %p36_p2, %p35_p8  ;;  %s2072_s14 = sshll.u32 %s185_s12, 5 }
  0x2c   : > { %s1558_s15 = sshll.u32 %s1958_s18, 9  ;;  %s189_s25 = scalar_lea.vmem [#allocation2], %s2072_s14 }
  0x2d   : > { %s2078_s24 = scalar_lea.hbm %s2257_s0, %s1558_s15  ;;  %s197_s26 = sshll.u32 %s189_s25, 4  ;;  %s2085_s26 = int_to_ptr.vmem [resolvable:$true] %s197_s26 }
  0x2e   : > { %p2081_p7 = pnand %p1757_p3, %p37_p6  ;;  %s2090_s6 = scalar_lea.hbm %s2258_s1, %s1558_s15 }
  0x2f   : > { %s2092_s7 = scalar_lea.sflag [#allocation3], %s185_s12  ;;  %s1856_s8 = scalar_lea.hbm %s2078_s24, 512 }
  0x30   : > { %p1857_p9 = scmp.ne.s32.totalorder %s2078_s24, %s1856_s8  ;;  %p1858_p10 = pneg %p2081_p7 }
  0x31   : > { %s1861_s22 = scalar_lea.hbm %s2257_s0, 2048  ;;  %p1862_p13 = scmp.lt.s32.totalorder %s2078_s24, %s2257_s0 }
  0x32   : > { %p1859_p11 = pnand %p1858_p10, %p1857_p9  ;;  %p1863_p8 = scmp.lt.s32.totalorder %s1861_s22, %s1856_s8 }
  0x34   : > { %p1860_p12 = pneg %p1859_p11  ;;  %p1864_p0 = por %p1863_p8, %p1862_p13 }
  0x36   : > { %p1865_p2 = pnand %p1864_p0, %p1860_p12 }
  0x38   : > { %1868 = shalt.err (!%p1865_p2)
}
  0x39   : > { %s1869_s12 = scalar_lea.vmem %s2085_s26, 512  ;;  %s1964_s15 = smov [#allocation2]  }
  0x3a   : > { %p1870_p3 = scmp.ne.s32.totalorder %s2085_s26, %s1869_s12  ;;  %s1874_s30 = sshll.u32 %s1964_s15, 4  ;;  %s1875_s30 = int_to_ptr.vmem [resolvable:$false] %s1874_s30 }
  0x3b   : > { %s1876_s5 = scalar_lea.vmem %s1875_s30, 1024  ;;  %p1877_p11 = scmp.lt.s32.totalorder %s2085_s26, %s1875_s30 }
  0x3c   : > { %p1872_p6 = pnand %p1870_p3, %p1858_p10  ;;  %p1878_p1 = scmp.lt.s32.totalorder %s1876_s5, %s1869_s12 }
  0x3e   : > { %p1873_p9 = pneg %p1872_p6  ;;  %p1879_p4 = por %p1878_p1, %p1877_p11 }
  0x40   : > { %p1880_p13 = pnand %p1879_p4, %p1873_p9 }
  0x42   : > { %1883 = shalt.err (!%p1880_p13)
}
  0x43   : > { %1751 = dma.hbm_to_vmem [thread:$0]  (!%p2081_p7), %s2078_s24, 512, %s2085_s26, %s2092_s7, %s1962_s28, %s1962_s28, %s1963_s29  }
  0x44   : > { %s211_s8 = scalar_lea.vmem [#allocation4], %s2072_s14  ;;  %s207_s11 = sand.u32 1, %s1958_s18  }
  0x45   : > { %s219_s10 = sshll.u32 %s211_s8, 4  ;;  %s208_s22 = scalar_lea.sflag [#allocation5], %s207_s11  ;;  %s2124_s10 = int_to_ptr.vmem [resolvable:$true] %s219_s10 }
  0x46   : > { %s1884_s23 = scalar_lea.hbm %s2090_s6, 512  ;;  %s1889_s15 = scalar_lea.hbm %s2258_s1, 2048 }
  0x47   : > { %p1885_p1 = scmp.ne.s32.totalorder %s2090_s6, %s1884_s23  ;;  %p1890_p8 = scmp.lt.s32.totalorder %s2090_s6, %s2258_s1 }
  0x48   : > { %p1891_p0 = scmp.lt.s32.totalorder %s1889_s15, %s1884_s23 }
  0x49   : > { %p1887_p4 = pnand %p1885_p1, %p1858_p10 }
  0x4a   : > { %p1892_p2 = por %p1891_p0, %p1890_p8 }
  0x4b   : > { %p1888_p12 = pneg %p1887_p4 }
  0x4d   : > { %p1893_p3 = pnand %p1892_p2, %p1888_p12 }
  0x4f   : > { %1896 = shalt.err (!%p1893_p3)
}
  0x50   : > { %s1897_s18 = scalar_lea.vmem %s2124_s10, 512  ;;  %s1965_s14 = smov [#allocation4]  }
  0x51   : > { %p1898_p6 = scmp.ne.s32.totalorder %s2124_s10, %s1897_s18  ;;  %s1902_s24 = sshll.u32 %s1965_s14, 4  ;;  %s1903_s24 = int_to_ptr.vmem [resolvable:$false] %s1902_s24 }
  0x52   : > { %s1904_s26 = scalar_lea.vmem %s1903_s24, 1024  ;;  %p1905_p13 = scmp.lt.s32.totalorder %s2124_s10, %s1903_s24 }
  0x53   : > { %p1900_p9 = pnand %p1898_p6, %p1858_p10  ;;  %p1906_p1 = scmp.lt.s32.totalorder %s1904_s26, %s1897_s18 }
  0x55   : > { %p1901_p11 = pneg %p1900_p9  ;;  %p1907_p4 = por %p1906_p1, %p1905_p13 }
  0x57   : > { %p1908_p8 = pnand %p1907_p4, %p1901_p11 }
  0x59   : > { %1911 = shalt.err (!%p1908_p8)
}
  0x5a   : > { %1754 = dma.hbm_to_vmem [thread:$0]  (!%p2081_p7), %s2090_s6, 512, %s2124_s10, %s208_s22, %s1962_s28, %s1962_s28, %s1963_s29  }
  0x5b   : > { %231 = sbr.rel (%p2022_p5) target bundleno = 768 (0x300), region = 36  ;;  %s233_s7 = sand.u32 (!%p2022_p5), 1, %s1950_s16  }
  0x5c   : > { %s1511_s8 = sshll.u32 (!%p2022_p5), %s233_s7, 5  ;;  %s234_s11 = scalar_lea.sflag (!%p2022_p5), [#allocation3], %s233_s7 }
  0x5d   : > { %s237_s23 = scalar_lea.vmem (!%p2022_p5), [#allocation2], %s1511_s8  ;;  %p2268_p10 = scmp.ne.s32.totalorder (!%p2022_p5), %s2264_s20, 0 }
  0x60   : > { %1929 = dma.done.wait (%p2268_p10), %s234_s11, 512  }
  0x61   : > { %1931 = vsyncadd (%p2268_p10), %s234_s11, 4294966784  ;;  %s242_s27 = sand.u32 1, %s2010_s19   ;;  %s246_s12 = scalar_lea.vmem [#allocation4], %s1511_s8 }
  0x62   : > { %s243_s25 = scalar_lea.sflag [#allocation5], %s242_s27 }
  0x63   : > { %1933 = dma.done.wait (%p2268_p10), %s243_s25, 512  }
  0x64   : > { %1935 = vsyncadd (%p2268_p10), %s243_s25, 4294966784  ;;  %p2269_p5 = scmp.eq.s32.totalorder %s2010_s19, 0 }
  0x66   : > { %1937 = dma.done.wait (%p2269_p5), [#allocation5], 256   ;;  %p2270_p7 = pmov %p2269_p5 }
  0x67   : > { %p2271_p12 = pmov %p2269_p5 }
  0x68   : > { %1939 = vsyncadd (%p2270_p7), [#allocation5], 4294967040 }
  0x69   : > { %1941 = dma.done.wait (%p2271_p12), [#allocation8], 256   ;;  %p2272_p0 = pmov %p2269_p5 }
  0x6a   : > { %vm309_vm0 = vcmask 130048   ;;  %v308_v0 = vld [vmem:[#allocation7 + $0x8] sm:$0xff]  ;;  %v307_v1 = vld [vmem:[#allocation7] sm:$0xff]  ;;  %v287_v2 = vld [vmem:[%s237_s23] sm:$0xff]  ;;  %p284_p2 = scmp.lt.s32.totalorder %s2010_s19, 3  ;;  %vm1394_vm1 = vcmask 0  }
  0x6b   : > { %1943 = vsyncadd (%p2272_p0), [#allocation8], 4294967040  ;;  %1623 = vmatprep.subr.mxu0 %v308_v0  ;;  %1627 = vmatprep.mubr.msk.f32.mxu0 %vm309_vm0, %v287_v2  ;;  %v288_v3 = vld [vmem:[%s237_s23 + $0x8] sm:$0xff]  ;;  %v289_v4 = vld [vmem:[%s237_s23 + $0x10] sm:$0xff]  ;;  %v295_v9 = vmul.f32 %v287_v2, %v287_v2 }
  0x6c   : > { %1624 = vmatpush3.msra.mxu0 %v308_v0  ;;  %v290_v5 = vld [vmem:[%s237_s23 + $0x18] sm:$0xff]  ;;  %v291_v6 = vld [vmem:[%s246_s12] sm:$0xff]  ;;  %v292_v7 = vld [vmem:[%s246_s12 + $0x8] sm:$0xff]  ;;  %v296_v11 = vmul.f32 %v288_v3, %v288_v3  ;;  %v297_v12 = vmul.f32 %v289_v4, %v289_v4  ;;  %s2278_s19 = smov (!%p284_p2, %s2010_s19), 3 }
  0x6d   : > { %1625 = vmatprep.subr.mxu0 %v307_v1  ;;  %v293_v8 = vld [vmem:[%s246_s12 + $0x10] sm:$0xff]  ;;  %v294_v10 = vld [vmem:[%s246_s12 + $0x18] sm:$0xff]  ;;  %v298_v13 = vmul.f32 %v290_v5, %v290_v5  ;;  %v299_v14 = vmul.f32 %v291_v6, %v291_v6  ;;  %v300_v15 = vmul.f32 %v292_v7, %v292_v7  ;;  %v303_v18 = vmul.f32 %v291_v6, %v287_v2  ;;  %v2191_v22 = vld [vmem:[#allocation6] sm:$0xff]  ;;  %s286_s28 = scalar_lea.vmem %s2261_s4, %s2278_s19 }
  0x6e   : > { %1626 = vmatpush3.msra.mxu0 %v307_v1  ;;  %v301_v16 = vmul.f32 %v293_v8, %v293_v8  ;;  %v302_v17 = vmul.f32 %v294_v10, %v294_v10  ;;  %v304_v19 = vmul.f32 %v292_v7, %v288_v3  ;;  %v305_v20 = vmul.f32 %v293_v8, %v289_v4  ;;  %v2195_v25 = vld [vmem:[#allocation6 + $0x8] sm:$0xff] }
  0x6f   : > { %1628 = vmatmul.mubr.msk.f32.vlgmr.msra.gmra.mxu0 %vm309_vm0, %v288_v3  ;;  %v306_v21 = vmul.f32 %v294_v10, %v290_v5  ;;  %1661 = vmatprep.mubr.msk.f32.mxu1 %vm309_vm0, %v2191_v22 }
  0x70   : > { %1630 = vmatprep.mubr.msk.f32.mxu0 %vm309_vm0, %v289_v4 }
  0x73   : > { %1631 = vmatmul.mubr.msk.f32.gmra.mxu0 %vm309_vm0, %v290_v5 }
  0x74   : > { %1633 = vmatprep.mubr.msk.f32.mxu0 %vm309_vm0, %v291_v6 }
  0x77   : > { %1634 = vmatmul.mubr.msk.f32.gmra.mxu0 %vm309_vm0, %v292_v7 }
  0x78   : > { %1636 = vmatprep.mubr.msk.f32.mxu0 %vm309_vm0, %v293_v8 }
  0x7b   : > { %1637 = vmatmul.mubr.msk.f32.gmra.mxu0 %vm309_vm0, %v294_v10 }
  0x7c   : > { %1639 = vmatprep.mubr.msk.f32.mxu0 %vm309_vm0, %v295_v9 }
  0x7f   : > { %1640 = vmatmul.mubr.msk.f32.gmra.mxu0 %vm309_vm0, %v296_v11 }
  0x80   : > { %1642 = vmatprep.mubr.msk.f32.mxu0 %vm309_vm0, %v297_v12 }
  0x83   : > { %1643 = vmatmul.mubr.msk.f32.gmra.mxu0 %vm309_vm0, %v298_v13 }
  0x84   : > { %1645 = vmatprep.mubr.msk.f32.mxu0 %vm309_vm0, %v299_v14 }
  0x87   : > { %1646 = vmatmul.mubr.msk.f32.gmra.mxu0 %vm309_vm0, %v300_v15 }
  0x88   : > { %1648 = vmatprep.mubr.msk.f32.mxu0 %vm309_vm0, %v301_v16 }
  0x8b   : > { %1649 = vmatmul.mubr.msk.f32.gmra.mxu0 %vm309_vm0, %v302_v17 }
  0x8c   : > { %1651 = vmatprep.mubr.msk.f32.mxu0 %vm309_vm0, %v303_v18 }
  0x8f   : > { %1652 = vmatmul.mubr.msk.f32.gmra.mxu0 %vm309_vm0, %v304_v19 }
  0x90   : > { %1654 = vmatprep.mubr.msk.f32.mxu0 %vm309_vm0, %v305_v20 }
  0x93   : > { %1655 = vmatmul.mubr.msk.f32.gmra.mxu0 %vm309_vm0, %v306_v21 }
 0x12f   : > { %v1629_v23 = vpop.f32.mrf.mxu0 }
 0x130   : > { %1657 = vmatprep.subr.mxu1 %v1629_v23 }
 0x131   : > { %v436_v24 = vpop.f32.mrf.mxu0  ;;  %1658 = vmatpush3.msra.mxu1 %v1629_v23 }
 0x132   : > { %1659 = vmatprep.subr.mxu1 %v436_v24 }
 0x133   : > { %v1632_v26 = vpop.f32.mrf.mxu0  ;;  %1660 = vmatpush3.msra.mxu1 %v436_v24 }
 0x134   : > { %1662 = vmatmul.mubr.msk.f32.vlgmr.msra.gmra.mxu1 %vm309_vm0, %v2195_v25  ;;  %1664 = vmatprep.subr.mxu1 %v1632_v26 }
 0x135   : > { %v446_v27 = vpop.f32.mrf.mxu0  ;;  %1665 = vmatpush3.msra.mxu1 %v1632_v26  ;;  %1668 = vmatprep.mubr.msk.f32.mxu1 %vm309_vm0, %v2191_v22 }
 0x136   : > { %1666 = vmatprep.subr.mxu1 %v446_v27 }
 0x137   : > { %v1635_v28 = vpop.f32.mrf.mxu0  ;;  %1667 = vmatpush3.msra.mxu1 %v446_v27 }
 0x138   : > { %1669 = vmatmul.mubr.msk.f32.vlgmr.msra.gmra.mxu1 %vm309_vm0, %v2195_v25  ;;  %1671 = vmatprep.subr.mxu1 %v1635_v28 }
 0x139   : > { %v456_v29 = vpop.f32.mrf.mxu0  ;;  %1672 = vmatpush3.msra.mxu1 %v1635_v28  ;;  %1675 = vmatprep.mubr.msk.f32.mxu1 %vm309_vm0, %v2191_v22 }
 0x13a   : > { %1673 = vmatprep.subr.mxu1 %v456_v29 }
 0x13b   : > { %v1638_v30 = vpop.f32.mrf.mxu0  ;;  %1674 = vmatpush3.msra.mxu1 %v456_v29 }
 0x13c   : > { %1676 = vmatmul.mubr.msk.f32.vlgmr.msra.gmra.mxu1 %vm309_vm0, %v2195_v25  ;;  %1678 = vmatprep.subr.mxu1 %v1638_v30 }
 0x13d   : > { %v466_v31 = vpop.f32.mrf.mxu0  ;;  %1679 = vmatpush3.msra.mxu1 %v1638_v30  ;;  %1682 = vmatprep.mubr.msk.f32.mxu1 %vm309_vm0, %v2191_v22 }
 0x13e   : > { %1680 = vmatprep.subr.mxu1 %v466_v31 }
 0x13f   : > { %v1641_v32 = vpop.f32.mrf.mxu0  ;;  %1681 = vmatpush3.msra.mxu1 %v466_v31 }
 0x140   : > { %1683 = vmatmul.mubr.msk.f32.vlgmr.msra.gmra.mxu1 %vm309_vm0, %v2195_v25  ;;  %1685 = vmatprep.subr.mxu1 %v1641_v32 }
 0x141   : > { %v476_v33 = vpop.f32.mrf.mxu0  ;;  %1686 = vmatpush3.msra.mxu1 %v1641_v32  ;;  %1689 = vmatprep.mubr.msk.f32.mxu1 %vm309_vm0, %v2191_v22 }
 0x142   : > { %1687 = vmatprep.subr.mxu1 %v476_v33 }
 0x143   : > { %v1644_v34 = vpop.f32.mrf.mxu0  ;;  %1688 = vmatpush3.msra.mxu1 %v476_v33 }
 0x144   : > { %1690 = vmatmul.mubr.msk.f32.vlgmr.msra.gmra.mxu1 %vm309_vm0, %v2195_v25  ;;  %1692 = vmatprep.subr.mxu1 %v1644_v34 }
 0x145   : > { %v486_v35 = vpop.f32.mrf.mxu0  ;;  %1693 = vmatpush3.msra.mxu1 %v1644_v34  ;;  %1696 = vmatprep.mubr.msk.f32.mxu1 %vm309_vm0, %v2191_v22 }
 0x146   : > { %1694 = vmatprep.subr.mxu1 %v486_v35 }
 0x147   : > { %v1647_v36 = vpop.f32.mrf.mxu0  ;;  %1695 = vmatpush3.msra.mxu1 %v486_v35 }
 0x148   : > { %1697 = vmatmul.mubr.msk.f32.vlgmr.msra.gmra.mxu1 %vm309_vm0, %v2195_v25  ;;  %1699 = vmatprep.subr.mxu1 %v1647_v36 }
 0x149   : > { %v496_v37 = vpop.f32.mrf.mxu0  ;;  %1700 = vmatpush3.msra.mxu1 %v1647_v36  ;;  %1703 = vmatprep.mubr.msk.f32.mxu1 %vm309_vm0, %v2191_v22 }
 0x14a   : > { %1701 = vmatprep.subr.mxu1 %v496_v37 }
 0x14b   : > { %v1650_v38 = vpop.f32.mrf.mxu0  ;;  %1702 = vmatpush3.msra.mxu1 %v496_v37 }
 0x14c   : > { %1704 = vmatmul.mubr.msk.f32.vlgmr.msra.gmra.mxu1 %vm309_vm0, %v2195_v25  ;;  %1706 = vmatprep.subr.mxu1 %v1650_v38 }
 0x14d   : > { %v506_v39 = vpop.f32.mrf.mxu0  ;;  %1707 = vmatpush3.msra.mxu1 %v1650_v38  ;;  %1710 = vmatprep.mubr.msk.f32.mxu1 %vm309_vm0, %v2191_v22 }
 0x14e   : > { %1708 = vmatprep.subr.mxu1 %v506_v39 }
 0x14f   : > { %v1653_v40 = vpop.f32.mrf.mxu0  ;;  %1709 = vmatpush3.msra.mxu1 %v506_v39 }
 0x150   : > { %1711 = vmatmul.mubr.msk.f32.vlgmr.msra.gmra.mxu1 %vm309_vm0, %v2195_v25  ;;  %1713 = vmatprep.subr.mxu1 %v1653_v40 }
 0x151   : > { %v516_v41 = vpop.f32.mrf.mxu0  ;;  %1714 = vmatpush3.msra.mxu1 %v1653_v40  ;;  %1717 = vmatprep.mubr.msk.f32.mxu1 %vm309_vm0, %v2191_v22 }
 0x152   : > { %1715 = vmatprep.subr.mxu1 %v516_v41 }
 0x153   : > { %v1656_v42 = vpop.f32.mrf.mxu0  ;;  %1716 = vmatpush3.msra.mxu1 %v516_v41 }
 0x154   : > { %1718 = vmatmul.mubr.msk.f32.vlgmr.msra.gmra.mxu1 %vm309_vm0, %v2195_v25  ;;  %1720 = vmatprep.subr.mxu1 %v1656_v42 }
 0x155   : > { %v526_v43 = vpop.f32.mrf.mxu0  ;;  %1721 = vmatpush3.msra.mxu1 %v1656_v42  ;;  %1724 = vmatprep.mubr.msk.f32.mxu1 %vm309_vm0, %v2191_v22 }
 0x156   : > { %1722 = vmatprep.subr.mxu1 %v526_v43 }
 0x157   : > { %1723 = vmatpush3.msra.mxu1 %v526_v43 }
 0x158   : > { %1725 = vmatmul.mubr.msk.f32.vlgmr.msra.gmra.mxu1 %vm309_vm0, %v2195_v25 }
 0x1f4   : > { %v1663_v44 = vpop.f32.mrf.mxu1 }
 0x1f5   : > { %v1294_v56 = vmul.f32 %v1663_v44, %v1663_v44 }
 0x1f6   : > { %v609_v45 = vpop.f32.mrf.mxu1 }
 0x1f7   : > { %v1293_v59 = vmul.f32 %v609_v45, %v609_v45 }
 0x1f8   : > { %v1670_v46 = vpop.f32.mrf.mxu1 }
 0x1f9   : > { %v1296_v1 = vmul.f32 %v1670_v46, %v1670_v46 }
 0x1fa   : > { %v684_v47 = vpop.f32.mrf.mxu1 }
 0x1fb   : > { %v1295_v8 = vmul.f32 %v684_v47, %v684_v47 }
 0x1fc   : > { %v1677_v48 = vpop.f32.mrf.mxu1 }
 0x1fd   : > { %v1298_v54 = vmul.f32 %v1677_v48, %v1677_v48  ;;  %v1302_v34 = vmul.f32 %v1677_v48, %v1663_v44 }
 0x1fe   : > { %v759_v49 = vpop.f32.mrf.mxu1 }
 0x1ff   : > { %v1297_v57 = vmul.f32 %v759_v49, %v759_v49  ;;  %v1338_v60 = vadd.f32 %v1298_v54, %v1294_v56  ;;  %v1301_v35 = vmul.f32 %v759_v49, %v609_v45 }
 0x200   : > { %v1684_v50 = vpop.f32.mrf.mxu1 }
 0x201   : > { %v1300_v61 = vmul.f32 %v1684_v50, %v1684_v50  ;;  %v1337_v2 = vadd.f32 %v1297_v57, %v1293_v59  ;;  %v1342_v9 = vadd.f32 0.0001, %v1338_v60  ;;  %v1304_v39 = vmul.f32 %v1684_v50, %v1670_v46 }
 0x202   : > { %v834_v51 = vpop.f32.mrf.mxu1 }
 0x203   : > { %v1299_v3 = vmul.f32 %v834_v51, %v834_v51  ;;  %v1340_v10 = vadd.f32 %v1300_v61, %v1296_v1  ;;  %v1341_v16 = vadd.f32 0.0001, %v1337_v2  ;;  %v1303_v41 = vmul.f32 %v834_v51, %v684_v47 }
 0x204   : > { %v1691_v52 = vpop.f32.mrf.mxu1  ;;  %v1320_v50 = vmul.f32 2.0, %v1304_v39 }
 0x205   : > { %v1306_v63 = vsub.f32 %v1691_v52, %v1294_v56  ;;  %v1339_v17 = vadd.f32 %v1299_v3, %v1295_v8  ;;  %v1344_v24 = vadd.f32 0.0001, %v1340_v10  ;;  %v1317_v56 = vmul.f32 2.0, %v1301_v35 }
 0x206   : > { %v909_v53 = vpop.f32.mrf.mxu1  ;;  %v1319_v47 = vmul.f32 2.0, %v1303_v41 }
 0x207   : > { %v1305_v5 = vsub.f32 %v909_v53, %v1293_v59  ;;  %v1343_v30 = vadd.f32 0.0001, %v1339_v17  ;;  %v1321_v46 = vadd.f32 0.0001, %v1317_v56 }
 0x208   : > { %v1698_v55 = vpop.f32.mrf.mxu1  ;;  %v1323_v10 = vadd.f32 0.0001, %v1319_v47 }
 0x209   : > { %v1308_v12 = vsub.f32 %v1698_v55, %v1296_v1  ;;  %v1318_v55 = vmul.f32 2.0, %v1302_v34 }
 0x20a   : > { %v984_v58 = vpop.f32.mrf.mxu1 }
 0x20b   : > { %v1307_v18 = vsub.f32 %v984_v58, %v1295_v8 }
 0x20c   : > { %v1705_v62 = vpop.f32.mrf.mxu1 }
 0x20d   : > { %v1310_v0 = vsub.f32 %v1705_v62, %v1298_v54  ;;  %v1322_v62 = vadd.f32 0.0001, %v1318_v55 }
 0x20e   : > { %v1059_v4 = vpop.f32.mrf.mxu1 }
 0x20f   : > { %v1346_v6 = vadd.f32 %v1310_v0, %v1306_v63  ;;  %v1309_v7 = vsub.f32 %v1059_v4, %v1297_v57 }
 0x210   : > { %v1712_v11 = vpop.f32.mrf.mxu1 }
 0x211   : > { %v1350_v13 = vadd.f32 0.0009, %v1346_v6  ;;  %v1345_v14 = vadd.f32 %v1309_v7, %v1305_v5  ;;  %v1312_v15 = vsub.f32 %v1712_v11, %v1300_v61 }
 0x212   : > { %v1134_v19 = vpop.f32.mrf.mxu1 }
 0x213   : > { %v1354_v20 = vmul.f32 %v1350_v13, %v1342_v9  ;;  %v1349_v21 = vadd.f32 0.0009, %v1345_v14  ;;  %v1348_v22 = vadd.f32 %v1312_v15, %v1308_v12  ;;  %v1311_v23 = vsub.f32 %v1134_v19, %v1299_v3 }
 0x214   : > { %v1719_v25 = vpop.f32.mrf.mxu1  ;;  %v1324_v9 = vadd.f32 0.0001, %v1320_v50 }
 0x215   : > { %1796 = vrcp.f32 %v1354_v20  ;;  %v1353_v26 = vmul.f32 %v1349_v21, %v1341_v16  ;;  %v1352_v27 = vadd.f32 0.0009, %v1348_v22  ;;  %v1347_v28 = vadd.f32 %v1311_v23, %v1307_v18 }
 0x216   : > { %v1209_v29 = vpop.f32.mrf.mxu1  ;;  %v1314_v37 = vsub.f32 %v1719_v25, %v1302_v34 }
 0x217   : > { %1798 = vrcp.f32 %v1353_v26  ;;  %v1356_v31 = vmul.f32 %v1352_v27, %v1344_v24  ;;  %v1351_v32 = vadd.f32 0.0009, %v1347_v28  ;;  %v1313_v38 = vsub.f32 %v1209_v29, %v1301_v35 }
 0x218   : > { %v1726_v36 = vpop.f32.mrf.mxu1  ;;  %v1326_v42 = vmul.f32 2.0, %v1314_v37 }
 0x219   : > { %1800 = vrcp.f32 %v1356_v31  ;;  %v1355_v33 = vmul.f32 %v1351_v32, %v1343_v30  ;;  %v1325_v43 = vmul.f32 2.0, %v1313_v38  ;;  %v1316_v52 = vsub.f32 %v1726_v36, %v1304_v39 }
 0x21a   : > { %v1284_v40 = vpop.f32.mrf.mxu1  ;;  %v1330_v59 = vadd.f32 0.0009, %v1326_v42 }
 0x21b   : > { %1802 = vrcp.f32 %v1355_v33  ;;  %v1315_v53 = vsub.f32 %v1284_v40, %v1303_v41  ;;  %v1329_v60 = vadd.f32 0.0009, %v1325_v43  ;;  %v1328_v44 = vmul.f32 2.0, %v1316_v52 }
 0x21c   : > { %v1334_v2 = vmul.f32 %v1330_v59, %v1322_v62 }
 0x21d   : > { %v1327_v49 = vmul.f32 2.0, %v1315_v53  ;;  %v1333_v3 = vmul.f32 %v1329_v60, %v1321_v46  ;;  %v1332_v4 = vadd.f32 0.0009, %v1328_v44 }
 0x21f   : > { %v1331_v7 = vadd.f32 0.0009, %v1327_v49  ;;  %v1336_v15 = vmul.f32 %v1332_v4, %v1324_v9 }
 0x221   : > { %v1335_v16 = vmul.f32 %v1331_v7, %v1323_v10 }
 0x222   : > { %v1797_v54 = vpop.eup %1796 }
 0x223   : > { %v1362_v57 = vmul.f32 %v1797_v54, %v1354_v20 }
 0x224   : > { %v1799_v58 = vpop.eup %1798 }
 0x225   : > { %v1366_v45 = vsub.f32 2.0, %v1362_v57  ;;  %v1361_v48 = vmul.f32 %v1799_v58, %v1353_v26 }
 0x226   : > { %v1801_v61 = vpop.eup %1800 }
 0x227   : > { %v1365_v51 = vsub.f32 2.0, %v1361_v48  ;;  %v1364_v63 = vmul.f32 %v1801_v61, %v1356_v31  ;;  %v1370_v0 = vmul.f32 %v1797_v54, %v1366_v45 }
 0x228   : > { %v1803_v1 = vpop.eup %1802 }
 0x229   : > { %v1363_v5 = vmul.f32 %v1803_v1, %v1355_v33  ;;  %v1369_v6 = vmul.f32 %v1799_v58, %v1365_v51  ;;  %v1368_v8 = vsub.f32 2.0, %v1364_v63  ;;  %v1374_v12 = vmul.f32 %v1370_v0, %v1334_v2 }
 0x22b   : > { %v1367_v11 = vsub.f32 2.0, %v1363_v5  ;;  %v1373_v13 = vmul.f32 %v1369_v6, %v1333_v3  ;;  %v1372_v14 = vmul.f32 %v1801_v61, %v1368_v8  ;;  %v1378_v21 = vsel %vm309_vm0, %v1374_v12, 0.0 }
 0x22d   : > { %v1371_v17 = vmul.f32 %v1803_v1, %v1367_v11  ;;  %v1377_v18 = vsel %vm309_vm0, %v1373_v13, 0.0  ;;  %v1376_v20 = vmul.f32 %v1372_v14, %v1336_v15 }
 0x22e   : > { %v1379_v22 = vadd.f32 %v1378_v21, %v1377_v18 }
 0x22f   : > { %v1375_v19 = vmul.f32 %v1371_v17, %v1335_v16  ;;  %v1382_v25 = vsel %vm309_vm0, %v1376_v20, 0.0 }
 0x231   : > { %v1380_v23 = vsel %vm309_vm0, %v1375_v19, 0.0 }
 0x232   : > { %v1381_v24 = vadd.f32 %v1380_v23, %v1379_v22 }
 0x234   : > { %v1383_v26 = vadd.f32 %v1382_v25, %v1381_v24 }
 0x236   : > { %1384 = vadd.xlane.f32.xlu0 %v1383_v26 }
 0x2bf   : > { %v1385_v27 = vpop.xlane.xlu0 %1384 }
 0x2c0   : > { %v1386_v28 = vrot.slane %v1385_v27, 4 }
 0x2c2   : > { %v1387_v29 = vadd.f32 %v1386_v28, %v1385_v27 }
 0x2c4   : > { %v1388_v30 = vrot.slane %v1387_v29, 2 }
 0x2c6   : > { %v1389_v31 = vadd.f32 %v1388_v30, %v1387_v29 }
 0x2c8   : > { %v1390_v32 = vrot.slane %v1389_v31, 1 }
 0x2ca   : > { %v1391_v33 = vadd.f32 %v1390_v32, %v1389_v31 }
 0x2cc   : > { %1727 = vpush %v1391_v33 }
 0x2fd   : > { %s1728_s29 = spop %1727 }
 0x2fe   : > { %v1393_v34 = vstv %s1728_s29 }
 0x2ff   : > { %1395 = vst.msk [vmem:[%s286_s28] sm:$0x1] %vm1394_vm1, %v1393_v34 }
 0x300 PF: > { %p18_p3 = scmp.ge.s32.totalorder %s2059_s9, 6   ;;  %s2273_s15 = smov %s1950_s16 }
 0x301   : > { %s2274_s16 = smov %s1954_s17  ;;  %s2275_s17 = smov %s2070_s13 }
 0x302   : > { %s2276_s18 = smov %s2059_s9  ;;  %20 = sbr.rel (!%p18_p3) target bundleno = 6 (0x6), region = 97 }
 0x307   :  { %1413 = vsyncpa [#allocation3], 1 }
 0x308   :  { %1415 = vsyncpa [#allocation3 + $0x1], 1 }
 0x309   :  { %1416 = vsyncpa [#allocation5], 1 }
 0x30a   :  { %1418 = vsyncpa [#allocation5 + $0x1], 1 }
 0x30b   :  { %1419 = vsyncpa [#allocation8], 1 }

</bundles_post_ra>
